<compile_context>
chip_gen: v7x
topology: tpu7x:2x2x1
jax: 0.10.0
libtpu: 0.0.40
codegen_flags: <defaults>
</compile_context>

<pallas_src>
import jax
import jax.numpy as jnp
import numpy as np
from jax.experimental import pallas as pl
from jax.experimental.pallas import tpu as pltpu


def _lstm_kernel(x_ref, wih_ref, whh_ref, b_ref, h0_ref, c0_ref,
                 h_out_ref, c_out_ref, xproj_ref):
    """Single invocation: whole sequence resident in VMEM, time loop in-kernel."""
    T, B, I = x_ref.shape
    H = h0_ref.shape[-1]

    # ---- Phase 1 (no sequential dependence): one big input projection. ----
    # X_proj[t, b, :] = x[t, b, :] @ W_ih^T + (b_ih + b_hh)
    x_all = x_ref[...].reshape(T * B, I)                                  # (T*B, I)
    xp = jnp.dot(x_all, wih_ref[...], preferred_element_type=jnp.float32)  # (T*B, 4H)
    xp = xp + b_ref[...]            # bias broadcast happens exactly once
    xproj_ref[...] = xp.reshape(T, B, 4 * H)

    whh = whh_ref[...]              # (H, 4H) stays resident across the loop

    # ---- Phase 2: the sequential recurrence (only h @ W_hh^T per step). ----
    def step(t, carry):
        h_prev, c_prev = carry
        gates = xproj_ref[t] + jnp.dot(h_prev, whh,
                                       preferred_element_type=jnp.float32)  # (B, 4H)
        i_g = jax.nn.sigmoid(gates[:, 0 * H:1 * H])
        f_g = jax.nn.sigmoid(gates[:, 1 * H:2 * H])
        g_g = jnp.tanh(gates[:, 2 * H:3 * H])
        o_g = jax.nn.sigmoid(gates[:, 3 * H:4 * H])
        c_new = f_g * c_prev + i_g * g_g
        h_new = o_g * jnp.tanh(c_new)
        return h_new, c_new

    h_n, c_n = jax.lax.fori_loop(0, T, step,
                                 (h0_ref[...], c0_ref[...]),
                                 unroll=True)
    h_out_ref[...] = h_n
    c_out_ref[...] = c_n


def prepare_encoder_params(w_ih, w_hh, b_ih, b_hh):
    """One-time model setup: pre-transpose weights, pre-fuse the two biases."""
    H = w_hh.shape[1]
    wih_t = jnp.asarray(w_ih, jnp.float32).T                 # (I, 4H)
    whh_t = jnp.asarray(w_hh, jnp.float32).T                 # (H, 4H)
    bias = (jnp.asarray(b_ih, jnp.float32)
            + jnp.asarray(b_hh, jnp.float32)).reshape(1, 4 * H)  # (1, 4H)
    return wih_t, whh_t, bias


def encoder_forward(params, x, h0=None):
    """x: (B, T, I) float32 (PyTorch batch_first). Returns (h_n, c_n), each (1, B, H)."""
    wih_t, whh_t, bias = params
    B, T, I = x.shape
    H = whh_t.shape[0]

    if h0 is None:
        h0_arr = jnp.zeros((B, H), jnp.float32)
        c0_arr = jnp.zeros((B, H), jnp.float32)
    else:
        h0_arr = h0[0].reshape(B, H).astype(jnp.float32)
        c0_arr = h0[1].reshape(B, H).astype(jnp.float32)

    x_tbi = jnp.transpose(x, (1, 0, 2)).astype(jnp.float32)   # (T, B, I), seq-major

    h_n, c_n = pl.pallas_call(
        _lstm_kernel,
        out_shape=(jax.ShapeDtypeStruct((B, H), jnp.float32),
                   jax.ShapeDtypeStruct((B, H), jnp.float32)),
        grid_spec=pltpu.PrefetchScalarGridSpec(
            num_scalar_prefetch=0,
            grid=(1,),
            in_specs=[
                pl.BlockSpec((T, B, I), lambda i: (0, 0, 0)),     # x (whole sequence)
                pl.BlockSpec((I, 4 * H), lambda i: (0, 0)),       # W_ih^T
                pl.BlockSpec((H, 4 * H), lambda i: (0, 0)),       # W_hh^T
                pl.BlockSpec((1, 4 * H), lambda i: (0, 0)),       # fused bias
                pl.BlockSpec((B, H), lambda i: (0, 0)),           # h0
                pl.BlockSpec((B, H), lambda i: (0, 0)),           # c0
            ],
            out_specs=(pl.BlockSpec((B, H), lambda i: (0, 0)),
                       pl.BlockSpec((B, H), lambda i: (0, 0))),
            scratch_shapes=[pltpu.VMEM((T, B, 4 * H), jnp.float32)],  # X_proj
        ),
        compiler_params=pltpu.CompilerParams(
            dimension_semantics=("arbitrary",)),   # single sequential invocation
    )(x_tbi, wih_t, whh_t, bias, h0_arr, c0_arr)

    # PyTorch returns (h_n, c_n) with shape (num_layers=1, B, H)
    return h_n[None, :, :], c_n[None, :, :]


def _reference_lstm(x, w_ih, w_hh, b_ih, b_hh):
    """Pure-JAX reference matching torch.nn.LSTM semantics (gate order i,f,g,o)."""
    B, T, I = x.shape
    H = w_hh.shape[1]
    h = jnp.zeros((B, H), jnp.float32)
    c = jnp.zeros((B, H), jnp.float32)

    def step(carry, x_t):
        h, c = carry
        gates = x_t @ w_ih.T + h @ w_hh.T + b_ih + b_hh
        i = jax.nn.sigmoid(gates[:, 0 * H:1 * H])
        f = jax.nn.sigmoid(gates[:, 1 * H:2 * H])
        g = jnp.tanh(gates[:, 2 * H:3 * H])
        o = jax.nn.sigmoid(gates[:, 3 * H:4 * H])
        c_new = f * c + i * g
        h_new = o * jnp.tanh(c_new)
        return (h_new, c_new), None

    (h, c), _ = jax.lax.scan(step, (h, c), jnp.transpose(x, (1, 0, 2)))
    return h[None], c[None]


if __name__ == "__main__":
    # Encoder(input_size=4, hidden_size=32, output_size=...); output_size unused.
    B, T, I, H = 2, 8, 4, 32

    key = jax.random.PRNGKey(0)
    k_x, k1, k2, k3, k4 = jax.random.split(key, 5)

    # Deterministic parameter init, same distribution as PyTorch: U(-1/sqrt(H), 1/sqrt(H))
    scale = 1.0 / np.sqrt(H)
    w_ih = jax.random.uniform(k1, (4 * H, I), jnp.float32, -scale, scale)
    w_hh = jax.random.uniform(k2, (4 * H, H), jnp.float32, -scale, scale)
    b_ih = jax.random.uniform(k3, (4 * H,), jnp.float32, -scale, scale)
    b_hh = jax.random.uniform(k4, (4 * H,), jnp.float32, -scale, scale)

    x = jax.random.normal(k_x, (B, T, I), jnp.float32)

    # One-time setup (weight transpose / bias fusion happens only here).
    params = prepare_encoder_params(w_ih, w_hh, b_ih, b_hh)
    forward = jax.jit(encoder_forward)

    h_n, c_n = forward(params, x)
    jax.block_until_ready((h_n, c_n))

    # Sanity check against a pure-JAX reference of torch.nn.LSTM semantics.
    h_ref, c_ref = _reference_lstm(x, w_ih, w_hh, b_ih, b_hh)
    assert h_n.shape == (1, B, H) and c_n.shape == (1, B, H)
    assert np.allclose(np.asarray(h_n), np.asarray(h_ref), atol=1e-5, rtol=1e-5)
    assert np.allclose(np.asarray(c_n), np.asarray(c_ref), atol=1e-5, rtol=1e-5)

    print("KERNEL_OK")
</pallas_src>

<mosaic_0001>
module attributes {stable_mosaic.version = 11 : i64} {
  func.func @_lstm_kernel(%arg0: i32, %arg1: memref<8x2x4xf32, #tpu.memory_space<vmem>>, %arg2: memref<4x128xf32, #tpu.memory_space<vmem>>, %arg3: memref<32x128xf32, #tpu.memory_space<vmem>>, %arg4: memref<1x128xf32, #tpu.memory_space<vmem>>, %arg5: memref<2x32xf32, #tpu.memory_space<vmem>>, %arg6: memref<2x32xf32, #tpu.memory_space<vmem>>, %arg7: memref<2x32xf32, #tpu.memory_space<vmem>>, %arg8: memref<2x32xf32, #tpu.memory_space<vmem>>, %arg9: memref<8x2x128xf32, #tpu.memory_space<vmem>>) attributes {dimension_semantics = [#tpu.dimension_semantics<arbitrary>], iteration_bounds = array<i64: 1>, scalar_prefetch = 0 : i64, scratch_operands = 1 : i64, tpu.core_type = #tpu.core_type<tc>, window_params = [{pipeline_mode = #tpu.pipeline_mode<synchronous>, transform_indices = @transform_0, window_bounds = array<i64: 8, 2, 4>}, {pipeline_mode = #tpu.pipeline_mode<synchronous>, transform_indices = @transform_1, window_bounds = array<i64: 4, 128>}, {pipeline_mode = #tpu.pipeline_mode<synchronous>, transform_indices = @transform_2, window_bounds = array<i64: 32, 128>}, {pipeline_mode = #tpu.pipeline_mode<synchronous>, transform_indices = @transform_3, window_bounds = array<i64: 1, 128>}, {pipeline_mode = #tpu.pipeline_mode<synchronous>, transform_indices = @transform_4, window_bounds = array<i64: 2, 32>}, {pipeline_mode = #tpu.pipeline_mode<synchronous>, transform_indices = @transform_5, window_bounds = array<i64: 2, 32>}, {pipeline_mode = #tpu.pipeline_mode<synchronous>, transform_indices = @transform_6, window_bounds = array<i64: 2, 32>}, {pipeline_mode = #tpu.pipeline_mode<synchronous>, transform_indices = @transform_7, window_bounds = array<i64: 2, 32>}]} {
    %c0 = arith.constant 0 : index
    %c0_0 = arith.constant 0 : index
    %c0_1 = arith.constant 0 : index
    %0 = vector.load %arg1[%c0, %c0_0, %c0_1] : memref<8x2x4xf32, #tpu.memory_space<vmem>>, vector<8x2x4xf32>
    %1 = vector.shape_cast %0 : vector<8x2x4xf32> to vector<16x4xf32>
    %c0_2 = arith.constant 0 : index
    %c0_3 = arith.constant 0 : index
    %2 = vector.load %arg2[%c0_2, %c0_3] : memref<4x128xf32, #tpu.memory_space<vmem>>, vector<4x128xf32>
    %cst = arith.constant dense<0.000000e+00> : vector<16x128xf32>
    %3 = tpu.matmul %1, %2, %cst {dimension_numbers = #tpu.dot_dimension_numbers<[1], [0], [0], [1], [0, 0, 1, 1], [], []>} : vector<16x4xf32>, vector<4x128xf32>, vector<16x128xf32> -> vector<16x128xf32>
    %c0_4 = arith.constant 0 : index
    %c0_5 = arith.constant 0 : index
    %4 = vector.load %arg4[%c0_4, %c0_5] : memref<1x128xf32, #tpu.memory_space<vmem>>, vector<1x128xf32>
    %5 = vector.broadcast %4 : vector<1x128xf32> to vector<16x128xf32>
    %6 = arith.addf %3, %5 : vector<16x128xf32>
    %7 = vector.shape_cast %6 : vector<16x128xf32> to vector<8x2x128xf32>
    %c0_6 = arith.constant 0 : index
    %c0_7 = arith.constant 0 : index
    %c0_8 = arith.constant 0 : index
    %8 = vector.load %arg9[%c0_6, %c0_7, %c0_8] : memref<8x2x128xf32, #tpu.memory_space<vmem>>, vector<8x2x128xf32>
    tpu.vector_store %arg9[%c0_6, %c0_7, %c0_8], %7 {strides = array<i32>} : memref<8x2x128xf32, #tpu.memory_space<vmem>>, vector<8x2x128xf32>,
    %c0_9 = arith.constant 0 : index
    %c0_10 = arith.constant 0 : index
    %9 = vector.load %arg3[%c0_9, %c0_10] : memref<32x128xf32, #tpu.memory_space<vmem>>, vector<32x128xf32>
    %c0_11 = arith.constant 0 : index
    %c0_12 = arith.constant 0 : index
    %10 = vector.load %arg5[%c0_11, %c0_12] : memref<2x32xf32, #tpu.memory_space<vmem>>, vector<2x32xf32>
    %c0_13 = arith.constant 0 : index
    %c0_14 = arith.constant 0 : index
    %11 = vector.load %arg6[%c0_13, %c0_14] : memref<2x32xf32, #tpu.memory_space<vmem>>, vector<2x32xf32>
    %c0_i32 = arith.constant 0 : i32
    %12 = arith.index_cast %c0_i32 : i32 to index
    %c0_15 = arith.constant 0 : index
    %c0_16 = arith.constant 0 : index
    %13 = vector.load %arg9[%12, %c0_15, %c0_16] : memref<8x2x128xf32, #tpu.memory_space<vmem>>, vector<1x2x128xf32>
    %14 = vector.shape_cast %13 : vector<1x2x128xf32> to vector<2x128xf32>
    %cst_17 = arith.constant dense<0.000000e+00> : vector<2x128xf32>
    %15 = tpu.matmul %10, %9, %cst_17 {dimension_numbers = #tpu.dot_dimension_numbers<[1], [0], [0], [1], [0, 0, 1, 1], [], []>} : vector<2x32xf32>, vector<32x128xf32>, vector<2x128xf32> -> vector<2x128xf32>
    %16 = arith.addf %14, %15 : vector<2x128xf32>
    %17 = vector.extract_strided_slice %16 {offsets = [0, 0], sizes = [2, 32], strides = [1, 1]} : vector<2x128xf32> to vector<2x32xf32>
    %18 = arith.negf %17 : vector<2x32xf32>
    %19 = math.exp %18 : vector<2x32xf32>
    %cst_18 = arith.constant 1.000000e+00 : f32
    %20 = vector.broadcast %cst_18 : f32 to vector<2x32xf32>
    %21 = arith.addf %20, %19 : vector<2x32xf32>
    %22 = arith.divf %20, %21 : vector<2x32xf32>
    %23 = vector.extract_strided_slice %16 {offsets = [0, 32], sizes = [2, 32], strides = [1, 1]} : vector<2x128xf32> to vector<2x32xf32>
    %24 = arith.negf %23 : vector<2x32xf32>
    %25 = math.exp %24 : vector<2x32xf32>
    %cst_19 = arith.constant 1.000000e+00 : f32
    %26 = vector.broadcast %cst_19 : f32 to vector<2x32xf32>
    %27 = arith.addf %26, %25 : vector<2x32xf32>
    %28 = arith.divf %26, %27 : vector<2x32xf32>
    %29 = vector.extract_strided_slice %16 {offsets = [0, 64], sizes = [2, 32], strides = [1, 1]} : vector<2x128xf32> to vector<2x32xf32>
    %30 = math.tanh %29 : vector<2x32xf32>
    %31 = vector.extract_strided_slice %16 {offsets = [0, 96], sizes = [2, 32], strides = [1, 1]} : vector<2x128xf32> to vector<2x32xf32>
    %32 = arith.negf %31 : vector<2x32xf32>
    %33 = math.exp %32 : vector<2x32xf32>
    %cst_20 = arith.constant 1.000000e+00 : f32
    %34 = vector.broadcast %cst_20 : f32 to vector<2x32xf32>
    %35 = arith.addf %34, %33 : vector<2x32xf32>
    %36 = arith.divf %34, %35 : vector<2x32xf32>
    %37 = arith.mulf %28, %11 : vector<2x32xf32>
    %38 = arith.mulf %22, %30 : vector<2x32xf32>
    %39 = arith.addf %37, %38 : vector<2x32xf32>
    %40 = math.tanh %39 : vector<2x32xf32>
    %41 = arith.mulf %36, %40 : vector<2x32xf32>
    %c1_i32 = arith.constant 1 : i32
    %42 = arith.index_cast %c1_i32 : i32 to index
    %c0_21 = arith.constant 0 : index
    %c0_22 = arith.constant 0 : index
    %43 = vector.load %arg9[%42, %c0_21, %c0_22] : memref<8x2x128xf32, #tpu.memory_space<vmem>>, vector<1x2x128xf32>
    %44 = vector.shape_cast %43 : vector<1x2x128xf32> to vector<2x128xf32>
    %cst_23 = arith.constant dense<0.000000e+00> : vector<2x128xf32>
    %45 = tpu.matmul %41, %9, %cst_23 {dimension_numbers = #tpu.dot_dimension_numbers<[1], [0], [0], [1], [0, 0, 1, 1], [], []>} : vector<2x32xf32>, vector<32x128xf32>, vector<2x128xf32> -> vector<2x128xf32>
    %46 = arith.addf %44, %45 : vector<2x128xf32>
    %47 = vector.extract_strided_slice %46 {offsets = [0, 0], sizes = [2, 32], strides = [1, 1]} : vector<2x128xf32> to vector<2x32xf32>
    %48 = arith.negf %47 : vector<2x32xf32>
    %49 = math.exp %48 : vector<2x32xf32>
    %cst_24 = arith.constant 1.000000e+00 : f32
    %50 = vector.broadcast %cst_24 : f32 to vector<2x32xf32>
    %51 = arith.addf %50, %49 : vector<2x32xf32>
    %52 = arith.divf %50, %51 : vector<2x32xf32>
    %53 = vector.extract_strided_slice %46 {offsets = [0, 32], sizes = [2, 32], strides = [1, 1]} : vector<2x128xf32> to vector<2x32xf32>
    %54 = arith.negf %53 : vector<2x32xf32>
    %55 = math.exp %54 : vector<2x32xf32>
    %cst_25 = arith.constant 1.000000e+00 : f32
    %56 = vector.broadcast %cst_25 : f32 to vector<2x32xf32>
    %57 = arith.addf %56, %55 : vector<2x32xf32>
    %58 = arith.divf %56, %57 : vector<2x32xf32>
    %59 = vector.extract_strided_slice %46 {offsets = [0, 64], sizes = [2, 32], strides = [1, 1]} : vector<2x128xf32> to vector<2x32xf32>
    %60 = math.tanh %59 : vector<2x32xf32>
    %61 = vector.extract_strided_slice %46 {offsets = [0, 96], sizes = [2, 32], strides = [1, 1]} : vector<2x128xf32> to vector<2x32xf32>
    %62 = arith.negf %61 : vector<2x32xf32>
    %63 = math.exp %62 : vector<2x32xf32>
    %cst_26 = arith.constant 1.000000e+00 : f32
    %64 = vector.broadcast %cst_26 : f32 to vector<2x32xf32>
    %65 = arith.addf %64, %63 : vector<2x32xf32>
    %66 = arith.divf %64, %65 : vector<2x32xf32>
    %67 = arith.mulf %58, %39 : vector<2x32xf32>
    %68 = arith.mulf %52, %60 : vector<2x32xf32>
    %69 = arith.addf %67, %68 : vector<2x32xf32>
    %70 = math.tanh %69 : vector<2x32xf32>
    %71 = arith.mulf %66, %70 : vector<2x32xf32>
    %c2_i32 = arith.constant 2 : i32
    %72 = arith.index_cast %c2_i32 : i32 to index
    %c0_27 = arith.constant 0 : index
    %c0_28 = arith.constant 0 : index
    %73 = vector.load %arg9[%72, %c0_27, %c0_28] : memref<8x2x128xf32, #tpu.memory_space<vmem>>, vector<1x2x128xf32>
    %74 = vector.shape_cast %73 : vector<1x2x128xf32> to vector<2x128xf32>
    %cst_29 = arith.constant dense<0.000000e+00> : vector<2x128xf32>
    %75 = tpu.matmul %71, %9, %cst_29 {dimension_numbers = #tpu.dot_dimension_numbers<[1], [0], [0], [1], [0, 0, 1, 1], [], []>} : vector<2x32xf32>, vector<32x128xf32>, vector<2x128xf32> -> vector<2x128xf32>
    %76 = arith.addf %74, %75 : vector<2x128xf32>
    %77 = vector.extract_strided_slice %76 {offsets = [0, 0], sizes = [2, 32], strides = [1, 1]} : vector<2x128xf32> to vector<2x32xf32>
    %78 = arith.negf %77 : vector<2x32xf32>
    %79 = math.exp %78 : vector<2x32xf32>
    %cst_30 = arith.constant 1.000000e+00 : f32
    %80 = vector.broadcast %cst_30 : f32 to vector<2x32xf32>
    %81 = arith.addf %80, %79 : vector<2x32xf32>
    %82 = arith.divf %80, %81 : vector<2x32xf32>
    %83 = vector.extract_strided_slice %76 {offsets = [0, 32], sizes = [2, 32], strides = [1, 1]} : vector<2x128xf32> to vector<2x32xf32>
    %84 = arith.negf %83 : vector<2x32xf32>
    %85 = math.exp %84 : vector<2x32xf32>
    %cst_31 = arith.constant 1.000000e+00 : f32
    %86 = vector.broadcast %cst_31 : f32 to vector<2x32xf32>
    %87 = arith.addf %86, %85 : vector<2x32xf32>
    %88 = arith.divf %86, %87 : vector<2x32xf32>
    %89 = vector.extract_strided_slice %76 {offsets = [0, 64], sizes = [2, 32], strides = [1, 1]} : vector<2x128xf32> to vector<2x32xf32>
    %90 = math.tanh %89 : vector<2x32xf32>
    %91 = vector.extract_strided_slice %76 {offsets = [0, 96], sizes = [2, 32], strides = [1, 1]} : vector<2x128xf32> to vector<2x32xf32>
    %92 = arith.negf %91 : vector<2x32xf32>
    %93 = math.exp %92 : vector<2x32xf32>
    %cst_32 = arith.constant 1.000000e+00 : f32
    %94 = vector.broadcast %cst_32 : f32 to vector<2x32xf32>
    %95 = arith.addf %94, %93 : vector<2x32xf32>
    %96 = arith.divf %94, %95 : vector<2x32xf32>
    %97 = arith.mulf %88, %69 : vector<2x32xf32>
    %98 = arith.mulf %82, %90 : vector<2x32xf32>
    %99 = arith.addf %97, %98 : vector<2x32xf32>
    %100 = math.tanh %99 : vector<2x32xf32>
    %101 = arith.mulf %96, %100 : vector<2x32xf32>
    %c3_i32 = arith.constant 3 : i32
    %102 = arith.index_cast %c3_i32 : i32 to index
    %c0_33 = arith.constant 0 : index
    %c0_34 = arith.constant 0 : index
    %103 = vector.load %arg9[%102, %c0_33, %c0_34] : memref<8x2x128xf32, #tpu.memory_space<vmem>>, vector<1x2x128xf32>
    %104 = vector.shape_cast %103 : vector<1x2x128xf32> to vector<2x128xf32>
    %cst_35 = arith.constant dense<0.000000e+00> : vector<2x128xf32>
    %105 = tpu.matmul %101, %9, %cst_35 {dimension_numbers = #tpu.dot_dimension_numbers<[1], [0], [0], [1], [0, 0, 1, 1], [], []>} : vector<2x32xf32>, vector<32x128xf32>, vector<2x128xf32> -> vector<2x128xf32>
    %106 = arith.addf %104, %105 : vector<2x128xf32>
    %107 = vector.extract_strided_slice %106 {offsets = [0, 0], sizes = [2, 32], strides = [1, 1]} : vector<2x128xf32> to vector<2x32xf32>
    %108 = arith.negf %107 : vector<2x32xf32>
    %109 = math.exp %108 : vector<2x32xf32>
    %cst_36 = arith.constant 1.000000e+00 : f32
    %110 = vector.broadcast %cst_36 : f32 to vector<2x32xf32>
    %111 = arith.addf %110, %109 : vector<2x32xf32>
    %112 = arith.divf %110, %111 : vector<2x32xf32>
    %113 = vector.extract_strided_slice %106 {offsets = [0, 32], sizes = [2, 32], strides = [1, 1]} : vector<2x128xf32> to vector<2x32xf32>
    %114 = arith.negf %113 : vector<2x32xf32>
    %115 = math.exp %114 : vector<2x32xf32>
    %cst_37 = arith.constant 1.000000e+00 : f32
    %116 = vector.broadcast %cst_37 : f32 to vector<2x32xf32>
    %117 = arith.addf %116, %115 : vector<2x32xf32>
    %118 = arith.divf %116, %117 : vector<2x32xf32>
    %119 = vector.extract_strided_slice %106 {offsets = [0, 64], sizes = [2, 32], strides = [1, 1]} : vector<2x128xf32> to vector<2x32xf32>
    %120 = math.tanh %119 : vector<2x32xf32>
    %121 = vector.extract_strided_slice %106 {offsets = [0, 96], sizes = [2, 32], strides = [1, 1]} : vector<2x128xf32> to vector<2x32xf32>
    %122 = arith.negf %121 : vector<2x32xf32>
    %123 = math.exp %122 : vector<2x32xf32>
    %cst_38 = arith.constant 1.000000e+00 : f32
    %124 = vector.broadcast %cst_38 : f32 to vector<2x32xf32>
    %125 = arith.addf %124, %123 : vector<2x32xf32>
    %126 = arith.divf %124, %125 : vector<2x32xf32>
    %127 = arith.mulf %118, %99 : vector<2x32xf32>
    %128 = arith.mulf %112, %120 : vector<2x32xf32>
    %129 = arith.addf %127, %128 : vector<2x32xf32>
    %130 = math.tanh %129 : vector<2x32xf32>
    %131 = arith.mulf %126, %130 : vector<2x32xf32>
    %c4_i32 = arith.constant 4 : i32
    %132 = arith.index_cast %c4_i32 : i32 to index
    %c0_39 = arith.constant 0 : index
    %c0_40 = arith.constant 0 : index
    %133 = vector.load %arg9[%132, %c0_39, %c0_40] : memref<8x2x128xf32, #tpu.memory_space<vmem>>, vector<1x2x128xf32>
    %134 = vector.shape_cast %133 : vector<1x2x128xf32> to vector<2x128xf32>
    %cst_41 = arith.constant dense<0.000000e+00> : vector<2x128xf32>
    %135 = tpu.matmul %131, %9, %cst_41 {dimension_numbers = #tpu.dot_dimension_numbers<[1], [0], [0], [1], [0, 0, 1, 1], [], []>} : vector<2x32xf32>, vector<32x128xf32>, vector<2x128xf32> -> vector<2x128xf32>
    %136 = arith.addf %134, %135 : vector<2x128xf32>
    %137 = vector.extract_strided_slice %136 {offsets = [0, 0], sizes = [2, 32], strides = [1, 1]} : vector<2x128xf32> to vector<2x32xf32>
    %138 = arith.negf %137 : vector<2x32xf32>
    %139 = math.exp %138 : vector<2x32xf32>
    %cst_42 = arith.constant 1.000000e+00 : f32
    %140 = vector.broadcast %cst_42 : f32 to vector<2x32xf32>
    %141 = arith.addf %140, %139 : vector<2x32xf32>
    %142 = arith.divf %140, %141 : vector<2x32xf32>
    %143 = vector.extract_strided_slice %136 {offsets = [0, 32], sizes = [2, 32], strides = [1, 1]} : vector<2x128xf32> to vector<2x32xf32>
    %144 = arith.negf %143 : vector<2x32xf32>
    %145 = math.exp %144 : vector<2x32xf32>
    %cst_43 = arith.constant 1.000000e+00 : f32
    %146 = vector.broadcast %cst_43 : f32 to vector<2x32xf32>
    %147 = arith.addf %146, %145 : vector<2x32xf32>
    %148 = arith.divf %146, %147 : vector<2x32xf32>
    %149 = vector.extract_strided_slice %136 {offsets = [0, 64], sizes = [2, 32], strides = [1, 1]} : vector<2x128xf32> to vector<2x32xf32>
    %150 = math.tanh %149 : vector<2x32xf32>
    %151 = vector.extract_strided_slice %136 {offsets = [0, 96], sizes = [2, 32], strides = [1, 1]} : vector<2x128xf32> to vector<2x32xf32>
    %152 = arith.negf %151 : vector<2x32xf32>
    %153 = math.exp %152 : vector<2x32xf32>
    %cst_44 = arith.constant 1.000000e+00 : f32
    %154 = vector.broadcast %cst_44 : f32 to vector<2x32xf32>
    %155 = arith.addf %154, %153 : vector<2x32xf32>
    %156 = arith.divf %154, %155 : vector<2x32xf32>
    %157 = arith.mulf %148, %129 : vector<2x32xf32>
    %158 = arith.mulf %142, %150 : vector<2x32xf32>
    %159 = arith.addf %157, %158 : vector<2x32xf32>
    %160 = math.tanh %159 : vector<2x32xf32>
    %161 = arith.mulf %156, %160 : vector<2x32xf32>
    %c5_i32 = arith.constant 5 : i32
    %162 = arith.index_cast %c5_i32 : i32 to index
    %c0_45 = arith.constant 0 : index
    %c0_46 = arith.constant 0 : index
    %163 = vector.load %arg9[%162, %c0_45, %c0_46] : memref<8x2x128xf32, #tpu.memory_space<vmem>>, vector<1x2x128xf32>
    %164 = vector.shape_cast %163 : vector<1x2x128xf32> to vector<2x128xf32>
    %cst_47 = arith.constant dense<0.000000e+00> : vector<2x128xf32>
    %165 = tpu.matmul %161, %9, %cst_47 {dimension_numbers = #tpu.dot_dimension_numbers<[1], [0], [0], [1], [0, 0, 1, 1], [], []>} : vector<2x32xf32>, vector<32x128xf32>, vector<2x128xf32> -> vector<2x128xf32>
    %166 = arith.addf %164, %165 : vector<2x128xf32>
    %167 = vector.extract_strided_slice %166 {offsets = [0, 0], sizes = [2, 32], strides = [1, 1]} : vector<2x128xf32> to vector<2x32xf32>
    %168 = arith.negf %167 : vector<2x32xf32>
    %169 = math.exp %168 : vector<2x32xf32>
    %cst_48 = arith.constant 1.000000e+00 : f32
    %170 = vector.broadcast %cst_48 : f32 to vector<2x32xf32>
    %171 = arith.addf %170, %169 : vector<2x32xf32>
    %172 = arith.divf %170, %171 : vector<2x32xf32>
    %173 = vector.extract_strided_slice %166 {offsets = [0, 32], sizes = [2, 32], strides = [1, 1]} : vector<2x128xf32> to vector<2x32xf32>
    %174 = arith.negf %173 : vector<2x32xf32>
    %175 = math.exp %174 : vector<2x32xf32>
    %cst_49 = arith.constant 1.000000e+00 : f32
    %176 = vector.broadcast %cst_49 : f32 to vector<2x32xf32>
    %177 = arith.addf %176, %175 : vector<2x32xf32>
    %178 = arith.divf %176, %177 : vector<2x32xf32>
    %179 = vector.extract_strided_slice %166 {offsets = [0, 64], sizes = [2, 32], strides = [1, 1]} : vector<2x128xf32> to vector<2x32xf32>
    %180 = math.tanh %179 : vector<2x32xf32>
    %181 = vector.extract_strided_slice %166 {offsets = [0, 96], sizes = [2, 32], strides = [1, 1]} : vector<2x128xf32> to vector<2x32xf32>
    %182 = arith.negf %181 : vector<2x32xf32>
    %183 = math.exp %182 : vector<2x32xf32>
    %cst_50 = arith.constant 1.000000e+00 : f32
    %184 = vector.broadcast %cst_50 : f32 to vector<2x32xf32>
    %185 = arith.addf %184, %183 : vector<2x32xf32>
    %186 = arith.divf %184, %185 : vector<2x32xf32>
    %187 = arith.mulf %178, %159 : vector<2x32xf32>
    %188 = arith.mulf %172, %180 : vector<2x32xf32>
    %189 = arith.addf %187, %188 : vector<2x32xf32>
    %190 = math.tanh %189 : vector<2x32xf32>
    %191 = arith.mulf %186, %190 : vector<2x32xf32>
    %c6_i32 = arith.constant 6 : i32
    %192 = arith.index_cast %c6_i32 : i32 to index
    %c0_51 = arith.constant 0 : index
    %c0_52 = arith.constant 0 : index
    %193 = vector.load %arg9[%192, %c0_51, %c0_52] : memref<8x2x128xf32, #tpu.memory_space<vmem>>, vector<1x2x128xf32>
    %194 = vector.shape_cast %193 : vector<1x2x128xf32> to vector<2x128xf32>
    %cst_53 = arith.constant dense<0.000000e+00> : vector<2x128xf32>
    %195 = tpu.matmul %191, %9, %cst_53 {dimension_numbers = #tpu.dot_dimension_numbers<[1], [0], [0], [1], [0, 0, 1, 1], [], []>} : vector<2x32xf32>, vector<32x128xf32>, vector<2x128xf32> -> vector<2x128xf32>
    %196 = arith.addf %194, %195 : vector<2x128xf32>
    %197 = vector.extract_strided_slice %196 {offsets = [0, 0], sizes = [2, 32], strides = [1, 1]} : vector<2x128xf32> to vector<2x32xf32>
    %198 = arith.negf %197 : vector<2x32xf32>
    %199 = math.exp %198 : vector<2x32xf32>
    %cst_54 = arith.constant 1.000000e+00 : f32
    %200 = vector.broadcast %cst_54 : f32 to vector<2x32xf32>
    %201 = arith.addf %200, %199 : vector<2x32xf32>
    %202 = arith.divf %200, %201 : vector<2x32xf32>
    %203 = vector.extract_strided_slice %196 {offsets = [0, 32], sizes = [2, 32], strides = [1, 1]} : vector<2x128xf32> to vector<2x32xf32>
    %204 = arith.negf %203 : vector<2x32xf32>
    %205 = math.exp %204 : vector<2x32xf32>
    %cst_55 = arith.constant 1.000000e+00 : f32
    %206 = vector.broadcast %cst_55 : f32 to vector<2x32xf32>
    %207 = arith.addf %206, %205 : vector<2x32xf32>
    %208 = arith.divf %206, %207 : vector<2x32xf32>
    %209 = vector.extract_strided_slice %196 {offsets = [0, 64], sizes = [2, 32], strides = [1, 1]} : vector<2x128xf32> to vector<2x32xf32>
    %210 = math.tanh %209 : vector<2x32xf32>
    %211 = vector.extract_strided_slice %196 {offsets = [0, 96], sizes = [2, 32], strides = [1, 1]} : vector<2x128xf32> to vector<2x32xf32>
    %212 = arith.negf %211 : vector<2x32xf32>
    %213 = math.exp %212 : vector<2x32xf32>
    %cst_56 = arith.constant 1.000000e+00 : f32
    %214 = vector.broadcast %cst_56 : f32 to vector<2x32xf32>
    %215 = arith.addf %214, %213 : vector<2x32xf32>
    %216 = arith.divf %214, %215 : vector<2x32xf32>
    %217 = arith.mulf %208, %189 : vector<2x32xf32>
    %218 = arith.mulf %202, %210 : vector<2x32xf32>
    %219 = arith.addf %217, %218 : vector<2x32xf32>
    %220 = math.tanh %219 : vector<2x32xf32>
    %221 = arith.mulf %216, %220 : vector<2x32xf32>
    %c7_i32 = arith.constant 7 : i32
    %222 = arith.index_cast %c7_i32 : i32 to index
    %c0_57 = arith.constant 0 : index
    %c0_58 = arith.constant 0 : index
    %223 = vector.load %arg9[%222, %c0_57, %c0_58] : memref<8x2x128xf32, #tpu.memory_space<vmem>>, vector<1x2x128xf32>
    %224 = vector.shape_cast %223 : vector<1x2x128xf32> to vector<2x128xf32>
    %cst_59 = arith.constant dense<0.000000e+00> : vector<2x128xf32>
    %225 = tpu.matmul %221, %9, %cst_59 {dimension_numbers = #tpu.dot_dimension_numbers<[1], [0], [0], [1], [0, 0, 1, 1], [], []>} : vector<2x32xf32>, vector<32x128xf32>, vector<2x128xf32> -> vector<2x128xf32>
    %226 = arith.addf %224, %225 : vector<2x128xf32>
    %227 = vector.extract_strided_slice %226 {offsets = [0, 0], sizes = [2, 32], strides = [1, 1]} : vector<2x128xf32> to vector<2x32xf32>
    %228 = arith.negf %227 : vector<2x32xf32>
    %229 = math.exp %228 : vector<2x32xf32>
    %cst_60 = arith.constant 1.000000e+00 : f32
    %230 = vector.broadcast %cst_60 : f32 to vector<2x32xf32>
    %231 = arith.addf %230, %229 : vector<2x32xf32>
    %232 = arith.divf %230, %231 : vector<2x32xf32>
    %233 = vector.extract_strided_slice %226 {offsets = [0, 32], sizes = [2, 32], strides = [1, 1]} : vector<2x128xf32> to vector<2x32xf32>
    %234 = arith.negf %233 : vector<2x32xf32>
    %235 = math.exp %234 : vector<2x32xf32>
    %cst_61 = arith.constant 1.000000e+00 : f32
    %236 = vector.broadcast %cst_61 : f32 to vector<2x32xf32>
    %237 = arith.addf %236, %235 : vector<2x32xf32>
    %238 = arith.divf %236, %237 : vector<2x32xf32>
    %239 = vector.extract_strided_slice %226 {offsets = [0, 64], sizes = [2, 32], strides = [1, 1]} : vector<2x128xf32> to vector<2x32xf32>
    %240 = math.tanh %239 : vector<2x32xf32>
    %241 = vector.extract_strided_slice %226 {offsets = [0, 96], sizes = [2, 32], strides = [1, 1]} : vector<2x128xf32> to vector<2x32xf32>
    %242 = arith.negf %241 : vector<2x32xf32>
    %243 = math.exp %242 : vector<2x32xf32>
    %cst_62 = arith.constant 1.000000e+00 : f32
    %244 = vector.broadcast %cst_62 : f32 to vector<2x32xf32>
    %245 = arith.addf %244, %243 : vector<2x32xf32>
    %246 = arith.divf %244, %245 : vector<2x32xf32>
    %247 = arith.mulf %238, %219 : vector<2x32xf32>
    %248 = arith.mulf %232, %240 : vector<2x32xf32>
    %249 = arith.addf %247, %248 : vector<2x32xf32>
    %250 = math.tanh %249 : vector<2x32xf32>
    %251 = arith.mulf %246, %250 : vector<2x32xf32>
    %c8_i32 = arith.constant 8 : i32
    %c0_63 = arith.constant 0 : index
    %c0_64 = arith.constant 0 : index
    %252 = vector.load %arg7[%c0_63, %c0_64] : memref<2x32xf32, #tpu.memory_space<vmem>>, vector<2x32xf32>
    tpu.vector_store %arg7[%c0_63, %c0_64], %251 {strides = array<i32>} : memref<2x32xf32, #tpu.memory_space<vmem>>, vector<2x32xf32>,
    %c0_65 = arith.constant 0 : index
    %c0_66 = arith.constant 0 : index
    %253 = vector.load %arg8[%c0_65, %c0_66] : memref<2x32xf32, #tpu.memory_space<vmem>>, vector<2x32xf32>
    tpu.vector_store %arg8[%c0_65, %c0_66], %249 {strides = array<i32>} : memref<2x32xf32, #tpu.memory_space<vmem>>, vector<2x32xf32>,
    return
  }
  func.func @transform_0(%arg0: i32) -> (i32, i32, i32) {
    %c0_i32 = arith.constant 0 : i32
    %c0_i32_0 = arith.constant 0 : i32
    %c0_i32_1 = arith.constant 0 : i32
    %c0_i32_2 = arith.constant 0 : i32
    return %c0_i32, %c0_i32_0, %c0_i32_1 : i32, i32, i32
  }
  func.func @transform_1(%arg0: i32) -> (i32, i32) {
    %c0_i32 = arith.constant 0 : i32
    %c0_i32_0 = arith.constant 0 : i32
    %c0_i32_1 = arith.constant 0 : i32
    return %c0_i32, %c0_i32_0 : i32, i32
  }
  func.func @transform_2(%arg0: i32) -> (i32, i32) {
    %c0_i32 = arith.constant 0 : i32
    %c0_i32_0 = arith.constant 0 : i32
    %c0_i32_1 = arith.constant 0 : i32
    return %c0_i32, %c0_i32_0 : i32, i32
  }
  func.func @transform_3(%arg0: i32) -> (i32, i32) {
    %c0_i32 = arith.constant 0 : i32
    %c0_i32_0 = arith.constant 0 : i32
    %c0_i32_1 = arith.constant 0 : i32
    return %c0_i32, %c0_i32_0 : i32, i32
  }
  func.func @transform_4(%arg0: i32) -> (i32, i32) {
    %c0_i32 = arith.constant 0 : i32
    %c0_i32_0 = arith.constant 0 : i32
    %c0_i32_1 = arith.constant 0 : i32
    return %c0_i32, %c0_i32_0 : i32, i32
  }
  func.func @transform_5(%arg0: i32) -> (i32, i32) {
    %c0_i32 = arith.constant 0 : i32
    %c0_i32_0 = arith.constant 0 : i32
    %c0_i32_1 = arith.constant 0 : i32
    return %c0_i32, %c0_i32_0 : i32, i32
  }
  func.func @transform_6(%arg0: i32) -> (i32, i32) {
    %c0_i32 = arith.constant 0 : i32
    %c0_i32_0 = arith.constant 0 : i32
    %c0_i32_1 = arith.constant 0 : i32
    return %c0_i32, %c0_i32_0 : i32, i32
  }
  func.func @transform_7(%arg0: i32) -> (i32, i32) {
    %c0_i32 = arith.constant 0 : i32
    %c0_i32_0 = arith.constant 0 : i32
    %c0_i32_1 = arith.constant 0 : i32
    return %c0_i32, %c0_i32_0 : i32, i32
  }
}

</mosaic_0001>

<bundles_post_ra>
// kernel: encoder_forward.1
= control target key start
LH: loop header
LB: loop body
LE: loop exit
PB: predicated region body
PF: predicated region fallthrough
CT: control target
= control target key end

     0   :  { %13 = vsyncpa [#allocation4], 0  ;;  %s1687_s0 = inlined_call_operand.vmem [shape: f32[8,2,4], index: 0, kind: input, shape index: {}]   ;;  %s1688_s1 = inlined_call_operand.hbm [shape: f32[4,128], index: 1, kind: input, shape index: {}]   ;;  %s1689_s2 = inlined_call_operand.vmem [shape: f32[32,128], index: 2, kind: input, shape index: {}]   ;;  %s1690_s3 = inlined_call_operand.vmem [shape: f32[1,128], index: 3, kind: input, shape index: {}]   ;;  %s1691_s4 = inlined_call_operand.vmem [shape: f32[2,32], index: 4, kind: input, shape index: {}, may-alias: {4,5}]   ;;  %s1692_s5 = inlined_call_operand.vmem [shape: f32[2,32], index: 5, kind: input, shape index: {}, may-alias: {4,5}]   ;;  %s1693_s6 = inlined_call_operand.hbm [shape: f32[2,32], index: 6, kind: output, shape index: {0}]   ;;  %s1694_s7 = inlined_call_operand.hbm [shape: f32[2,32], index: 7, kind: output, shape index: {1}]  }
   0x1   :  { %14 = vsyncpa [#allocation5], 0 }
   0x2   :  { %15 = vsyncpa [#allocation8], 0  ;;  %s1451_s24 = smov [#allocation3]   ;;  %s1379_s28 = scalar_lea.hbm %s1688_s1, 64 }
   0x3   :  { %s24_s25 = sshll.u32 %s1451_s24, 4  ;;  %p1380_p0 = scmp.ne.s32.totalorder %s1688_s1, %s1379_s28  ;;  %s25_s25 = int_to_ptr.vmem [resolvable:$true] %s24_s25 }
   0x4   :  { %p1383_p1 = scmp.lt.u32.totalorder %s1379_s28, %s1688_s1 }
   0x6   :  { %p1385_p2 = pnand %p1383_p1, %p1380_p0 }
   0x8   :  { %1388 = shalt.err (!%p1385_p2)
}
   0x9   :  { %s1389_s10 = scalar_lea.vmem %s25_s25, 64  ;;  %p1394_p4 = scmp.lt.s32.totalorder %s25_s25, %s25_s25 }
   0xa   :  { %p1390_p3 = scmp.ne.s32.totalorder %s25_s25, %s1389_s10  ;;  %p1395_p5 = scmp.lt.s32.totalorder %s1389_s10, %s1389_s10 }
   0xc   :  { %p1396_p6 = por %p1395_p5, %p1394_p4 }
   0xe   :  { %p1397_p7 = pnand %p1396_p6, %p1390_p3 }
  0x10   :  { %1400 = shalt.err (!%p1397_p7)
}
  0x11   :  { %27 = dma.hbm_to_vmem [thread:$0]  %s1688_s1, 64, %s25_s25, [#allocation4]  }
  0x12   :  { %1445 = dma.done.wait [#allocation4], 64  }
  0x13   :  { %1446 = vsyncadd [#allocation4], 4294967232  ;;  %v68_v0 = vlaneseq  ;;  %v1452_v1 = vmov 1983009808   ;;  %v1453_v4 = vmov 0.0|0.0   ;;  %vm1454_vm0 = vmmov 0  }
  0x14   :  { %v66_v2 = vunpack.c.l.s4 %v1452_v1  ;;  %1257 = vmatprep.subr.bf16.mxu1 %v1453_v4  ;;  %v1455_v5 = vmov 0.0   ;;  %vm102_vm1 = vcmask 1043456   ;;  %v47_v8 = vld [vmem:[#allocation3] sm:$0xf]  ;;  %v39_v9 = vld [vmem:[%s1687_s0] sm:$0x3] }
  0x15   :  { %v69_v3 = vshrl.u32 %v68_v0, 7  ;;  %1177 = vmatprep.mubr.msk.f32.mxu1 %vm1454_vm0, %v1455_v5  ;;  %v40_v10 = vld [vmem:[%s1687_s0 + $0x2] sm:$0x3]  ;;  %1164 = vmatprep.subr.msk.mxu0 %vm102_vm1, %v47_v8  ;;  %v41_v11 = vld [vmem:[%s1687_s0 + $0x4] sm:$0x3]  ;;  %v234_v23 = vld [vmem:[%s1689_s2 + $0x8] sm:$0xff] }
  0x16   :  { %v67_v6 = vunpack.c.0.s8 %v66_v2  ;;  %v42_v12 = vld [vmem:[%s1687_s0 + $0x6] sm:$0x3]  ;;  %v63_v13 = vcombine.low %v39_v9, %v40_v10  ;;  %v43_v14 = vld [vmem:[%s1687_s0 + $0x8] sm:$0x3]  ;;  %1165 = vmatpush3.msk.msra.mxu0 %vm102_vm1, %v47_v8  ;;  %v44_v16 = vld [vmem:[%s1687_s0 + $0xa] sm:$0x3] }
  0x17   :  { %v64_v15 = vcombine.low %v41_v11, %v42_v12  ;;  %v45_v17 = vld [vmem:[%s1687_s0 + $0xc] sm:$0x3]  ;;  %v46_v18 = vld [vmem:[%s1687_s0 + $0xe] sm:$0x3]  ;;  %v80_v20 = vcombine.low %v43_v14, %v44_v16  ;;  %v233_v22 = vld [vmem:[%s1689_s2] sm:$0xff]  ;;  %1263 = vmatprep.subr.bf16.mxu0 %v1453_v4  ;;  %vm97_vm2 = vcmask 31744  }
  0x18   :  { %v1516_v7 = vsub.s32 %v67_v6, %v69_v3  ;;  %v81_v21 = vcombine.low %v45_v17, %v46_v18  ;;  %v235_v24 = vld [vmem:[%s1689_s2 + $0x10] sm:$0xff]  ;;  %v1554_v26 = vpack.c.bf16 %v234_v23, %v233_v22  ;;  %v236_v27 = vld [vmem:[%s1689_s2 + $0x18] sm:$0xff]  ;;  %v237_v33 = vld [vmem:[%s1691_s4] sm:$0x3]  ;;  %vm240_vm3 = vcmask 261120   ;;  %s1457_s15 = smov 32  }
  0x19   :  { %v1562_v31 = vpack.c.bf16 %v236_v27, %v235_v24  ;;  %v1097_v34 = vld [vmem:[%s1690_s3] ss:$0 sm:$0xff]  ;;  %s1456_s3 = smov 64   ;;  %s1459_s16 = smov [#allocation7]   ;;  %vm1061_vm4 = vcmask 254976  }
  0x1a   :  { %v71_v19 = vrot.slane %v63_v13, %v1516_v7  ;;  %v78_v25 = vrot.slane %v64_v15, %v1516_v7  ;;  %v88_v28 = vrot.slane %v80_v20, %v1516_v7  ;;  %v95_v29 = vrot.slane %v81_v21, %v1516_v7  ;;  %1259 = vmatpush3.bf16.msra.mxu1 %v1554_v26  ;;  %v238_v54 = vld [vmem:[%s1692_s5] sm:$0x3]  ;;  %s1458_s5 = smov 96   ;;  %s1084_s17 = sshll.u32 %s1459_s16, 4  ;;  %s1085_s17 = int_to_ptr.vmem [resolvable:$true] %s1084_s17 }
  0x1b   :  { %1260 = vmatprep.subr.bf16.mxu1 %v1453_v4  ;;  %s1401_s18 = scalar_lea.vmem %s1085_s17, 32  ;;  %p1406_p9 = scmp.lt.s32.totalorder %s1085_s17, %s1085_s17 }
  0x1c   :  { %v79_v30 = vcombine.low %v71_v19, %v78_v25  ;;  %v96_v32 = vcombine.low %v88_v28, %v95_v29  ;;  %p1402_p8 = scmp.ne.s32.totalorder %s1085_s17, %s1401_s18  ;;  %p1407_p10 = scmp.lt.s32.totalorder %s1401_s18, %s1401_s18 }
  0x1e   :  { %1166 = vmatprep.mubr.msk.f32.mxu0 %vm97_vm2, %v79_v30  ;;  %1262 = vmatpush3.bf16.msra.mxu1 %v1562_v31  ;;  %p1408_p11 = por %p1407_p10, %p1406_p9 }
  0x1f   :  { %1167 = vmatmul.mubr.msk.f32.vlgmr.msra.gmra.mrb[0].mxu0 %vm97_vm2, %v96_v32  ;;  %1269 = vmatprep.subr.bf16.mxu1 %v1453_v4 }
  0x20   :  { %1265 = vmatpush3.bf16.msra.mxu0 %v1554_v26  ;;  %1188 = vmatprep.mubr.msk.f32.mxu0 %vm1454_vm0, %v1455_v5  ;;  %p1409_p12 = pnand %p1408_p11, %p1402_p8 }
  0x21   :  { %1266 = vmatprep.subr.bf16.mxu0 %v1453_v4  ;;  %1178 = vmatmul.mubr.msk.f32.vlgmr.msra.gmra.mrb[0].mxu1 %vm240_vm3, %v237_v33 }
  0x22   :  { %1271 = vmatpush3.bf16.msra.mxu1 %v1554_v26  ;;  %1199 = vmatprep.mubr.msk.f32.mxu1 %vm1454_vm0, %v1455_v5 }
  0x23   :  { %1272 = vmatprep.subr.bf16.mxu1 %v1453_v4 }
  0x24   :  { %1268 = vmatpush3.bf16.msra.mxu0 %v1562_v31 }
  0x25   :  { %1275 = vmatprep.subr.bf16.mxu0 %v1453_v4 }
  0x26   :  { %1274 = vmatpush3.bf16.msra.mxu1 %v1562_v31 }
  0x27   :  { %1281 = vmatprep.subr.bf16.mxu1 %v1453_v4 }
  0xf2   :  { %v1168_v35 = vpop.f32.mrb[0].mxu0 }
  0xf3   :  { %v178_v36 = vadd.f32 %v1168_v35, %v1097_v34  ;;  %v172_v37 = vpop.f32.mrb[1].mxu0 }
  0xf4   :  { %v173_v38 = vadd.f32 %v1097_v34, %v172_v37  ;;  %v310_v43 = vpop.f32.mrb[0].mxu1 }
  0xf5   :  { %v200_v39 = vcombine.high %v178_v36, %v178_v36  ;;  %v207_v40 = vrot.slane %v178_v36, %v1516_v7  ;;  %1103 = vst.sshfl [vmem:[#allocation2 + $0x8] sm:$0x3 pattern:$0x76325410] %v178_v36  ;;  %v1179_v46 = vpop.f32.mrb[1].mxu1 }
  0xf6   :  { %v183_v41 = vcombine.high %v173_v38, %v173_v38  ;;  %v190_v42 = vrot.slane %v173_v38, %v1516_v7  ;;  %1101 = vst.sshfl [vmem:[#allocation2] sm:$0x3 pattern:$0x76325410] %v173_v38 }
  0xf7   :  { %v214_v44 = vrot.slane %v200_v39, %v1516_v7  ;;  %v215_v45 = vcombine.high %v207_v40, %v207_v40  ;;  %1104 = vst.sshfl [vmem:[#allocation2 + $0xc] sm:$0x3 pattern:$0x76325410] %v200_v39 }
  0xf8   :  { %v197_v47 = vrot.slane %v183_v41, %v1516_v7  ;;  %v198_v48 = vcombine.high %v190_v42, %v190_v42  ;;  %1102 = vst.sshfl [vmem:[#allocation2 + $0x4] sm:$0x3 pattern:$0x76325410] %v183_v41 }
  0xf9   :  { %v216_v49 = vcombine.high %v214_v44, %v214_v44  ;;  %230 = vst [vmem:[#allocation2 + $0xa] sm:$0x3] %v215_v45 }
  0xfa   :  { %v199_v50 = vcombine.high %v197_v47, %v197_v47  ;;  %226 = vst [vmem:[#allocation2 + $0x2] sm:$0x3] %v198_v48 }
  0xfb   :  { %232 = vst [vmem:[#allocation2 + $0xe] sm:$0x3] %v216_v49 }
  0xfc   :  { %228 = vst [vmem:[#allocation2 + $0x6] sm:$0x3] %v199_v50 }
  0xfd   :  { %v239_v51 = vld [vmem:[#allocation2] sm:$0x3] }
  0xfe   :  { %v314_v52 = vadd.f32 %v310_v43, %v239_v51 }
  0xff   :  { %v446_v25 = vld [vmem:[#allocation2 + $0x4] sm:$0x3] }
 0x100   :  { %1315 = vtanh.f32 %v314_v52  ;;  %v1106_v55 = vmul.f32 -1.442695, %v314_v52 }
 0x101   :  { %v344_v7 = vld [vmem:[#allocation2 + $0x2] sm:$0x3] }
 0x102   :  { %1317 = vpow2.f32 %v1106_v55 }
 0x103   :  { %v548_v45 = vld [vmem:[#allocation2 + $0x6] sm:$0x3] }
 0x10a   :  { %v1316_v53 = vpop.eup %1315 }
 0x10b   :  { %328 = vrot.lane.b32.xlu0 %v1316_v53, %s1456_s3 }
 0x10c   :  { %v1318_v56 = vpop.eup %1317 }
 0x10d   :  { %v318_v57 = vadd.f32 1.0, %v1318_v56 }
 0x10f   :  { %323 = vrot.lane.b32.xlu0 %v238_v54, %s1457_s15  ;;  %1319 = vrcp.f32 %v318_v57 }
 0x119   :  { %v1320_v58 = vpop.eup %1319 }
 0x17d   :  { %v329_v59 = vpop.permute.xlu0 %328 }
 0x17e   :  { %v331_v60 = vmul.f32 %v1320_v58, %v329_v59 }
 0x180   :  { %333 = vrot.lane.b32.xlu1 %v331_v60, %s1457_s15 }
 0x181   :  { %v324_v61 = vpop.permute.xlu0 %323 }
 0x182   :  { %v326_v62 = vmul.f32 %v1320_v58, %v324_v61 }
 0x1f2   :  { %v334_v63 = vpop.permute.xlu1 %333 }
 0x1f3   :  { %v336_v0 = vadd.f32 %v334_v63, %v326_v62  ;;  %v650_v63 = vld [vmem:[#allocation2 + $0x8] sm:$0x3] }
 0x1f5   :  { %1321 = vtanh.f32 %v336_v0 }
 0x1ff   :  { %v1322_v1 = vpop.eup %1321 }
 0x200   :  { %339 = vrot.lane.b32.xlu1 %v1322_v1, %s1456_s3 }
 0x272   :  { %v340_v2 = vpop.permute.xlu1 %339 }
 0x273   :  { %v342_v3 = vmul.f32 %v1320_v58, %v340_v2 }
 0x275   :  { %346 = vrot.lane.b32.xlu0 %v342_v3, %s1457_s15 }
 0x2e7   :  { %v347_v6 = vpop.permute.xlu0 %346 }
 0x2e8   :  { %1189 = vmatmul.mubr.msk.f32.vlgmr.msra.gmra.mrb[2].mxu0 %vm240_vm3, %v347_v6 }
 0x2e9   :  { %1277 = vmatpush3.bf16.msra.mxu0 %v1554_v26  ;;  %1210 = vmatprep.mubr.msk.f32.mxu0 %vm1454_vm0, %v1455_v5 }
 0x2ea   :  { %1278 = vmatprep.subr.bf16.mxu0 %v1453_v4 }
 0x2ed   :  { %1280 = vmatpush3.bf16.msra.mxu0 %v1562_v31 }
 0x2ee   :  { %1287 = vmatprep.subr.bf16.mxu0 %v1453_v4 }
 0x3bb   :  { %v416_v8 = vpop.f32.mrb[2].mxu0 }
 0x3bc   :  { %v420_v9 = vadd.f32 %v416_v8, %v344_v7  ;;  %v1190_v10 = vpop.f32.mrb[3].mxu0 }
 0x3be   :  { %1323 = vtanh.f32 %v420_v9  ;;  %v1108_v12 = vmul.f32 -1.442695, %v420_v9 }
 0x3c0   :  { %1325 = vpow2.f32 %v1108_v12 }
 0x3c8   :  { %v1324_v11 = vpop.eup %1323 }
 0x3c9   :  { %430 = vrot.lane.b32.xlu1 %v1324_v11, %s1456_s3 }
 0x3ca   :  { %v1326_v13 = vpop.eup %1325 }
 0x3cb   :  { %v424_v14 = vadd.f32 1.0, %v1326_v13 }
 0x3cd   :  { %1327 = vrcp.f32 %v424_v14 }
 0x3d7   :  { %v1328_v15 = vpop.eup %1327 }
 0x3d8   :  { %v428_v18 = vmul.f32 %v1328_v15, %v336_v0 }
 0x43b   :  { %v431_v16 = vpop.permute.xlu1 %430 }
 0x43c   :  { %v433_v17 = vmul.f32 %v1328_v15, %v431_v16 }
 0x43e   :  { %435 = vrot.lane.b32.xlu0 %v433_v17, %s1457_s15 }
 0x4b0   :  { %v436_v19 = vpop.permute.xlu0 %435 }
 0x4b1   :  { %v438_v20 = vadd.f32 %v436_v19, %v428_v18  ;;  %v752_v19 = vld [vmem:[#allocation2 + $0xa] sm:$0x3] }
 0x4b3   :  { %1329 = vtanh.f32 %v438_v20 }
 0x4bd   :  { %v1330_v21 = vpop.eup %1329 }
 0x4be   :  { %441 = vrot.lane.b32.xlu1 %v1330_v21, %s1456_s3 }
 0x530   :  { %v442_v22 = vpop.permute.xlu1 %441 }
 0x531   :  { %v444_v23 = vmul.f32 %v1328_v15, %v442_v22 }
 0x533   :  { %448 = vrot.lane.b32.xlu0 %v444_v23, %s1457_s15 }
 0x5a5   :  { %v449_v24 = vpop.permute.xlu0 %448 }
 0x5a6   :  { %1200 = vmatmul.mubr.msk.f32.vlgmr.msra.gmra.mrb[2].mxu1 %vm240_vm3, %v449_v24 }
 0x5a7   :  { %1283 = vmatpush3.bf16.msra.mxu1 %v1554_v26  ;;  %1221 = vmatprep.mubr.msk.f32.mxu1 %vm1454_vm0, %v1455_v5 }
 0x5a8   :  { %1284 = vmatprep.subr.bf16.mxu1 %v1453_v4 }
 0x5ab   :  { %1286 = vmatpush3.bf16.msra.mxu1 %v1562_v31 }
 0x5ac   :  { %1293 = vmatprep.subr.bf16.mxu1 %v1453_v4 }
 0x679   :  { %v518_v27 = vpop.f32.mrb[2].mxu1 }
 0x67a   :  { %v522_v28 = vadd.f32 %v518_v27, %v446_v25  ;;  %v1201_v29 = vpop.f32.mrb[3].mxu1 }
 0x67c   :  { %1331 = vtanh.f32 %v522_v28  ;;  %v1110_v32 = vmul.f32 -1.442695, %v522_v28 }
 0x67e   :  { %1333 = vpow2.f32 %v1110_v32 }
 0x686   :  { %v1332_v30 = vpop.eup %1331 }
 0x687   :  { %532 = vrot.lane.b32.xlu1 %v1332_v30, %s1456_s3 }
 0x688   :  { %v1334_v33 = vpop.eup %1333 }
 0x689   :  { %v526_v34 = vadd.f32 1.0, %v1334_v33 }
 0x68b   :  { %1335 = vrcp.f32 %v526_v34 }
 0x695   :  { %v1336_v35 = vpop.eup %1335 }
 0x696   :  { %v530_v38 = vmul.f32 %v1336_v35, %v438_v20 }
 0x6f9   :  { %v533_v36 = vpop.permute.xlu1 %532 }
 0x6fa   :  { %v535_v37 = vmul.f32 %v1336_v35, %v533_v36 }
 0x6fc   :  { %537 = vrot.lane.b32.xlu0 %v535_v37, %s1457_s15 }
 0x76e   :  { %v538_v39 = vpop.permute.xlu0 %537 }
 0x76f   :  { %v540_v40 = vadd.f32 %v538_v39, %v530_v38 }
 0x771   :  { %1337 = vtanh.f32 %v540_v40 }
 0x77b   :  { %v1338_v41 = vpop.eup %1337 }
 0x77c   :  { %543 = vrot.lane.b32.xlu1 %v1338_v41, %s1456_s3 }
 0x7ee   :  { %v544_v42 = vpop.permute.xlu1 %543 }
 0x7ef   :  { %v546_v43 = vmul.f32 %v1336_v35, %v544_v42  ;;  %v854_v35 = vld [vmem:[#allocation2 + $0xc] sm:$0x3] }
 0x7f1   :  { %550 = vrot.lane.b32.xlu0 %v546_v43, %s1457_s15 }
 0x863   :  { %v551_v44 = vpop.permute.xlu0 %550 }
 0x864   :  { %1211 = vmatmul.mubr.msk.f32.vlgmr.msra.gmra.mrb[4].mxu0 %vm240_vm3, %v551_v44 }
 0x865   :  { %1289 = vmatpush3.bf16.msra.mxu0 %v1554_v26  ;;  %1232 = vmatprep.mubr.msk.f32.mxu0 %vm1454_vm0, %v1455_v5 }
 0x866   :  { %1290 = vmatprep.subr.bf16.mxu0 %v1453_v4 }
 0x869   :  { %1292 = vmatpush3.bf16.msra.mxu0 %v1562_v31 }
 0x86a   :  { %1299 = vmatprep.subr.bf16.mxu0 %v1453_v4 }
 0x937   :  { %v620_v46 = vpop.f32.mrb[4].mxu0 }
 0x938   :  { %v624_v47 = vadd.f32 %v620_v46, %v548_v45  ;;  %v1212_v48 = vpop.f32.mrb[5].mxu0 }
 0x93a   :  { %1339 = vtanh.f32 %v624_v47  ;;  %v1112_v50 = vmul.f32 -1.442695, %v624_v47 }
 0x93c   :  { %1341 = vpow2.f32 %v1112_v50 }
 0x944   :  { %v1340_v49 = vpop.eup %1339 }
 0x945   :  { %634 = vrot.lane.b32.xlu1 %v1340_v49, %s1456_s3 }
 0x946   :  { %v1342_v51 = vpop.eup %1341 }
 0x947   :  { %v628_v52 = vadd.f32 1.0, %v1342_v51 }
 0x949   :  { %1343 = vrcp.f32 %v628_v52 }
 0x953   :  { %v1344_v53 = vpop.eup %1343 }
 0x954   :  { %v632_v56 = vmul.f32 %v1344_v53, %v540_v40 }
 0x9b7   :  { %v635_v54 = vpop.permute.xlu1 %634 }
 0x9b8   :  { %v637_v55 = vmul.f32 %v1344_v53, %v635_v54 }
 0x9ba   :  { %639 = vrot.lane.b32.xlu0 %v637_v55, %s1457_s15 }
 0xa2c   :  { %v640_v57 = vpop.permute.xlu0 %639 }
 0xa2d   :  { %v642_v58 = vadd.f32 %v640_v57, %v632_v56 }
 0xa2f   :  { %1345 = vtanh.f32 %v642_v58 }
 0xa39   :  { %v1346_v59 = vpop.eup %1345 }
 0xa3a   :  { %645 = vrot.lane.b32.xlu1 %v1346_v59, %s1456_s3 }
 0xaac   :  { %v646_v60 = vpop.permute.xlu1 %645 }
 0xaad   :  { %v648_v61 = vmul.f32 %v1344_v53, %v646_v60  ;;  %v956_v53 = vld [vmem:[#allocation2 + $0xe] sm:$0x3] }
 0xaaf   :  { %652 = vrot.lane.b32.xlu0 %v648_v61, %s1457_s15 }
 0xb21   :  { %v653_v62 = vpop.permute.xlu0 %652 }
 0xb22   :  { %1222 = vmatmul.mubr.msk.f32.vlgmr.msra.gmra.mrb[4].mxu1 %vm240_vm3, %v653_v62 }
 0xb23   :  { %1295 = vmatpush3.bf16.msra.mxu1 %v1554_v26  ;;  %1243 = vmatprep.mubr.msk.f32.mxu1 %vm1454_vm0, %v1455_v5 }
 0xb24   :  { %1296 = vmatprep.subr.bf16.mxu1 %v1453_v4 }
 0xb27   :  { %1298 = vmatpush3.bf16.msra.mxu1 %v1562_v31 }
 0xbf5   :  { %v722_v0 = vpop.f32.mrb[4].mxu1 }
 0xbf6   :  { %v726_v1 = vadd.f32 %v722_v0, %v650_v63  ;;  %v1223_v2 = vpop.f32.mrb[5].mxu1 }
 0xbf8   :  { %1347 = vtanh.f32 %v726_v1  ;;  %v1114_v6 = vmul.f32 -1.442695, %v726_v1 }
 0xbfa   :  { %1349 = vpow2.f32 %v1114_v6 }
 0xc02   :  { %v1348_v3 = vpop.eup %1347 }
 0xc03   :  { %736 = vrot.lane.b32.xlu1 %v1348_v3, %s1456_s3 }
 0xc04   :  { %v1350_v7 = vpop.eup %1349 }
 0xc05   :  { %v730_v8 = vadd.f32 1.0, %v1350_v7 }
 0xc07   :  { %1351 = vrcp.f32 %v730_v8 }
 0xc11   :  { %v1352_v9 = vpop.eup %1351 }
 0xc12   :  { %v734_v12 = vmul.f32 %v1352_v9, %v642_v58 }
 0xc75   :  { %v737_v10 = vpop.permute.xlu1 %736 }
 0xc76   :  { %v739_v11 = vmul.f32 %v1352_v9, %v737_v10 }
 0xc78   :  { %741 = vrot.lane.b32.xlu0 %v739_v11, %s1457_s15 }
 0xcea   :  { %v742_v13 = vpop.permute.xlu0 %741 }
 0xceb   :  { %v744_v14 = vadd.f32 %v742_v13, %v734_v12 }
 0xced   :  { %1353 = vtanh.f32 %v744_v14 }
 0xcf7   :  { %v1354_v15 = vpop.eup %1353 }
 0xcf8   :  { %747 = vrot.lane.b32.xlu1 %v1354_v15, %s1456_s3 }
 0xd6a   :  { %v748_v16 = vpop.permute.xlu1 %747 }
 0xd6b   :  { %v750_v17 = vmul.f32 %v1352_v9, %v748_v16 }
 0xd6d   :  { %754 = vrot.lane.b32.xlu0 %v750_v17, %s1457_s15 }
 0xddf   :  { %v755_v18 = vpop.permute.xlu0 %754 }
 0xde0   :  { %1233 = vmatmul.mubr.msk.f32.vlgmr.msra.gmra.mrb[6].mxu0 %vm240_vm3, %v755_v18 }
 0xde1   :  { %1301 = vmatpush3.bf16.msra.mxu0 %v1554_v26  ;;  %1254 = vmatprep.mubr.msk.f32.mxu0 %vm1454_vm0, %v1455_v5 }
 0xde2   :  { %1302 = vmatprep.subr.bf16.mxu0 %v1453_v4 }
 0xde5   :  { %1304 = vmatpush3.bf16.msra.mxu0 %v1562_v31 }
 0xeb3   :  { %v824_v20 = vpop.f32.mrb[6].mxu0 }
 0xeb4   :  { %v828_v21 = vadd.f32 %v824_v20, %v752_v19  ;;  %v1234_v22 = vpop.f32.mrb[7].mxu0 }
 0xeb6   :  { %1355 = vtanh.f32 %v828_v21  ;;  %v1116_v24 = vmul.f32 -1.442695, %v828_v21 }
 0xeb8   :  { %1357 = vpow2.f32 %v1116_v24 }
 0xec0   :  { %v1356_v23 = vpop.eup %1355 }
 0xec1   :  { %838 = vrot.lane.b32.xlu1 %v1356_v23, %s1456_s3 }
 0xec2   :  { %v1358_v25 = vpop.eup %1357 }
 0xec3   :  { %v832_v27 = vadd.f32 1.0, %v1358_v25 }
 0xec5   :  { %1359 = vrcp.f32 %v832_v27 }
 0xecf   :  { %v1360_v26 = vpop.eup %1359 }
 0xed0   :  { %v836_v4 = vmul.f32 %v1360_v26, %v744_v14 }
 0xf33   :  { %v839_v28 = vpop.permute.xlu1 %838 }
 0xf34   :  { %v841_v5 = vmul.f32 %v1360_v26, %v839_v28 }
 0xf36   :  { %843 = vrot.lane.b32.xlu0 %v841_v5, %s1457_s15 }
 0xfa8   :  { %v844_v31 = vpop.permute.xlu0 %843 }
 0xfa9   :  { %v846_v29 = vadd.f32 %v844_v31, %v836_v4 }
 0xfab   :  { %1361 = vtanh.f32 %v846_v29 }
 0xfb5   :  { %v1362_v30 = vpop.eup %1361 }
 0xfb6   :  { %849 = vrot.lane.b32.xlu1 %v1362_v30, %s1456_s3 }
0x1028   :  { %v850_v32 = vpop.permute.xlu1 %849 }
0x1029   :  { %v852_v33 = vmul.f32 %v1360_v26, %v850_v32 }
0x102b   :  { %856 = vrot.lane.b32.xlu0 %v852_v33, %s1457_s15 }
0x109d   :  { %v857_v34 = vpop.permute.xlu0 %856 }
0x109e   :  { %1244 = vmatmul.mubr.msk.f32.vlgmr.msra.gmra.mrb[6].mxu1 %vm240_vm3, %v857_v34 }
0x1171   :  { %v926_v36 = vpop.f32.mrb[6].mxu1 }
0x1172   :  { %v930_v37 = vadd.f32 %v926_v36, %v854_v35  ;;  %v1245_v38 = vpop.f32.mrb[7].mxu1 }
0x1174   :  { %1363 = vtanh.f32 %v930_v37  ;;  %v1118_v40 = vmul.f32 -1.442695, %v930_v37 }
0x1176   :  { %1365 = vpow2.f32 %v1118_v40 }
0x117e   :  { %v1364_v39 = vpop.eup %1363 }
0x117f   :  { %940 = vrot.lane.b32.xlu1 %v1364_v39, %s1456_s3 }
0x1180   :  { %v1366_v41 = vpop.eup %1365 }
0x1181   :  { %v934_v42 = vadd.f32 1.0, %v1366_v41 }
0x1183   :  { %1367 = vrcp.f32 %v934_v42 }
0x118d   :  { %v1368_v43 = vpop.eup %1367 }
0x118e   :  { %v938_v46 = vmul.f32 %v1368_v43, %v846_v29 }
0x11f1   :  { %v941_v44 = vpop.permute.xlu1 %940 }
0x11f2   :  { %v943_v45 = vmul.f32 %v1368_v43, %v941_v44 }
0x11f4   :  { %945 = vrot.lane.b32.xlu0 %v943_v45, %s1457_s15 }
0x1266   :  { %v946_v47 = vpop.permute.xlu0 %945 }
0x1267   :  { %v948_v48 = vadd.f32 %v946_v47, %v938_v46 }
0x1269   :  { %1369 = vtanh.f32 %v948_v48 }
0x1273   :  { %v1370_v49 = vpop.eup %1369 }
0x1274   :  { %951 = vrot.lane.b32.xlu1 %v1370_v49, %s1456_s3 }
0x12e6   :  { %v952_v50 = vpop.permute.xlu1 %951 }
0x12e7   :  { %v954_v51 = vmul.f32 %v1368_v43, %v952_v50 }
0x12e9   :  { %958 = vrot.lane.b32.xlu0 %v954_v51, %s1457_s15 }
0x135b   :  { %v959_v52 = vpop.permute.xlu0 %958 }
0x135c   :  { %1255 = vmatmul.mubr.msk.f32.vlgmr.msra.gmra.mrb[8].mxu0 %vm240_vm3, %v959_v52 }
0x142f   :  { %v1028_v54 = vpop.f32.mrb[8].mxu0 }
0x1430   :  { %v1032_v55 = vadd.f32 %v1028_v54, %v956_v53  ;;  %v1256_v56 = vpop.f32.mrb[9].mxu0 }
0x1432   :  { %1371 = vtanh.f32 %v1032_v55  ;;  %v1120_v58 = vmul.f32 -1.442695, %v1032_v55 }
0x1434   :  { %1373 = vpow2.f32 %v1120_v58 }
0x143c   :  { %v1372_v57 = vpop.eup %1371 }
0x143d   :  { %1042 = vrot.lane.b32.xlu1 %v1372_v57, %s1456_s3 }
0x143e   :  { %v1374_v59 = vpop.eup %1373 }
0x143f   :  { %v1036_v60 = vadd.f32 1.0, %v1374_v59 }
0x1441   :  { %1375 = vrcp.f32 %v1036_v60 }
0x144b   :  { %v1376_v61 = vpop.eup %1375 }
0x144c   :  { %v1040_v0 = vmul.f32 %v1376_v61, %v948_v48 }
0x14af   :  { %v1043_v62 = vpop.permute.xlu1 %1042 }
0x14b0   :  { %v1045_v63 = vmul.f32 %v1376_v61, %v1043_v62 }
0x14b2   :  { %1047 = vrot.lane.b32.xlu0 %v1045_v63, %s1457_s15 }
0x1524   :  { %v1048_v1 = vpop.permute.xlu0 %1047 }
0x1525   :  { %v1050_v2 = vadd.f32 %v1048_v1, %v1040_v0 }
0x1527   :  { %1377 = vtanh.f32 %v1050_v2 }
0x1531   :  { %v1378_v3 = vpop.eup %1377 }
0x1532   :  { %1053 = vrot.lane.b32.xlu1 %v1378_v3, %s1456_s3 }
0x1536   :  { %1064 = vrot.lane.b32.xlu1 %v1050_v2, %s1458_s5 }
0x15a4   :  { %v1054_v6 = vpop.permute.xlu1 %1053 }
0x15a5   :  { %v1056_v7 = vmul.f32 %v1376_v61, %v1054_v6 }
0x15a7   :  { %1058 = vrot.lane.b32.xlu0 %v1056_v7, %s1457_s15 }
0x15a8   :  { %v1065_v8 = vpop.permute.xlu1 %1064 }
0x15a9   :  { %1067 = vst.msk [vmem:[#allocation7] sm:$0x3] %vm1061_vm4, %v1065_v8 }
0x15aa   :  { %1412 = shalt.err (!%p1409_p12)
}
0x15ab   :  { %s1413_s21 = scalar_lea.hbm %s1694_s7, 32 }
0x15ac   :  { %p1414_p13 = scmp.ne.s32.totalorder %s1694_s7, %s1413_s21  ;;  %p1417_p0 = scmp.lt.u32.totalorder %s1413_s21, %s1694_s7 }
0x15ae   :  { %p1419_p1 = pnand %p1417_p0, %p1414_p13 }
0x15b0   :  { %1422 = shalt.err (!%p1419_p1)
}
0x15b1   :  { %1087 = dma.vmem_to_hbm [thread:$0]  %s1085_s17, 32, %s1694_s7, [#allocation8]  }
0x15b2   :  { %s1460_s28 = smov [#allocation6]  }
0x15b3   :  { %s1074_s29 = sshll.u32 %s1460_s28, 4  ;;  %s1075_s29 = int_to_ptr.vmem [resolvable:$true] %s1074_s29 }
0x15b4   :  { %s1423_s30 = scalar_lea.vmem %s1075_s29, 32  ;;  %p1428_p3 = scmp.lt.s32.totalorder %s1075_s29, %s1075_s29 }
0x15b5   :  { %p1424_p2 = scmp.ne.s32.totalorder %s1075_s29, %s1423_s30  ;;  %p1429_p4 = scmp.lt.s32.totalorder %s1423_s30, %s1423_s30 }
0x15b7   :  { %p1430_p5 = por %p1429_p4, %p1428_p3 }
0x15b9   :  { %p1431_p6 = pnand %p1430_p5, %p1424_p2 }
0x1619   :  { %v1059_v9 = vpop.permute.xlu0 %1058 }
0x161a   :  { %1062 = vst.msk [vmem:[#allocation6] sm:$0x3] %vm1061_vm4, %v1059_v9 }
0x161b   :  { %1434 = shalt.err (!%p1431_p6)
}
0x161c   :  { %s1435_s10 = scalar_lea.hbm %s1693_s6, 32 }
0x161d   :  { %p1436_p7 = scmp.ne.s32.totalorder %s1693_s6, %s1435_s10  ;;  %p1439_p8 = scmp.lt.u32.totalorder %s1435_s10, %s1693_s6 }
0x161f   :  { %p1441_p9 = pnand %p1439_p8, %p1436_p7 }
0x1621   :  { %1444 = shalt.err (!%p1441_p9)
}
0x1622   :  { %1077 = dma.vmem_to_hbm [thread:$0]  %s1075_s29, 32, %s1693_s6, [#allocation5]  }
0x1623   :  { %1447 = dma.done.wait [#allocation5], 32  }
0x1624   :  { %1448 = vsyncadd [#allocation5], 4294967264 }
0x1625   :  { %1449 = dma.done.wait [#allocation8], 32  }
0x1626   :  { %1450 = vsyncadd [#allocation8], 4294967264 }
0x1627   :  { %1094 = vsyncpa [#allocation4], 1 }
0x1628   :  { %1095 = vsyncpa [#allocation5], 1 }
0x1629   :  { %1096 = vsyncpa [#allocation8], 1 }

</bundles_post_ra>
